<compile_context>
chip_gen: v6e
topology: v6e:2x2x1
jax: 0.10.0
libtpu: 0.0.40
codegen_flags: <defaults>
</compile_context>

<pallas_src>
import jax
import jax.numpy as jnp
from jax import lax
from jax.experimental import pallas as pl
from jax.experimental.pallas import tpu as pltpu

IN_F, H1_F, H2_F, OUT_F = 28, 10, 4, 2
_P_ROWS, _P_COLS = 64, IN_F      # packed-parameter buffer shape (rows 8-aligned per tensor)
_TB_MAX = 512                    # max batch rows per grid tile


def _round_up(n, m):
    return ((n + m - 1) // m) * m


def mlp_kernel(x_ref, p_ref, o_ref):
    # x_ref: (TB, 28) input rows (batch tile).
    # p_ref: (64, 28) packed parameters, resident across the whole grid.
    # o_ref: (2, TB) transposed class probabilities (batch on lanes -> lane-dense).
    x = x_ref[...]                                   # (TB, 28)

    w1t = p_ref[0:10, :]                             # (10, 28)  = W1^T
    w2t = p_ref[16:20, 0:10]                         # (4, 10)   = W2^T
    dw3 = p_ref[24:25, 0:4]                          # (1, 4)    = (W3[:,0] - W3[:,1])^T
    b1c = p_ref[32:42, 0:1]                          # (10, 1)   = b1 as a column
    b2c = p_ref[48:52, 0:1]                          # (4, 1)    = b2 as a column
    db3 = p_ref[56:57, 0:1]                          # (1, 1)    = b3[0] - b3[1]

    # Transposed orientation: batch lives on the lane axis, features on sublanes.
    # h1 = tanh(W1^T @ x^T + b1)        -> (10, TB)
    h1 = jnp.tanh(
        lax.dot_general(w1t, x, (((1,), (1,)), ((), ())),
                        preferred_element_type=jnp.float32) + b1c)
    # h2 = tanh(W2^T @ h1 + b2)         -> (4, TB)
    h2 = jnp.tanh(
        jnp.dot(w2t, h1, preferred_element_type=jnp.float32) + b2c)

    # softmax over 2 classes == sigmoid of the logit difference -> no reductions.
    z = jnp.dot(dw3, h2, preferred_element_type=jnp.float32) + db3   # (1, TB)
    p0 = 1.0 / (1.0 + jnp.exp(-z))
    o_ref[...] = jnp.concatenate([p0, 1.0 - p0], axis=0)             # (2, TB)


def _pack_params(w1, b1, w2, b2, w3, b3):
    """Pack all weights/biases (pre-transposed / pre-differenced) into one (64,28) f32 buffer."""
    w1 = w1.astype(jnp.float32)
    w2 = w2.astype(jnp.float32)
    w3 = w3.astype(jnp.float32)
    b1 = jnp.reshape(b1, (-1,)).astype(jnp.float32)
    b2 = jnp.reshape(b2, (-1,)).astype(jnp.float32)
    b3 = jnp.reshape(b3, (-1,)).astype(jnp.float32)

    P = jnp.zeros((_P_ROWS, _P_COLS), jnp.float32)
    P = P.at[0:10, 0:28].set(w1.T)                   # W1^T
    P = P.at[16:20, 0:10].set(w2.T)                  # W2^T
    P = P.at[24, 0:4].set(w3[:, 0] - w3[:, 1])       # logit-difference weights
    P = P.at[32:42, 0].set(b1)                       # b1 column
    P = P.at[48:52, 0].set(b2)                       # b2 column
    P = P.at[56, 0].set(b3[0] - b3[1])               # logit-difference bias
    return P


def _forward_impl(x, w1, b1, w2, b2, w3, b3):
    B = x.shape[0]
    x = x.astype(jnp.float32)
    P = _pack_params(w1, b1, w2, b2, w3, b3)

    TB = min(_TB_MAX, _round_up(B, 128))             # lane-dense tile width
    num_tiles = pl.cdiv(B, TB)
    B_pad = num_tiles * TB
    if B_pad != B:                                   # pad tail tile (sliced off below)
        x = jnp.pad(x, ((0, B_pad - B), (0, 0)))

    out_t = pl.pallas_call(
        mlp_kernel,
        out_shape=jax.ShapeDtypeStruct((OUT_F, B_pad), jnp.float32),
        grid=(num_tiles,),
        in_specs=[
            pl.BlockSpec((TB, IN_F), lambda i: (i, 0)),            # x: tiled over batch
            pl.BlockSpec((_P_ROWS, _P_COLS), lambda i: (0, 0)),    # params: fetched once, resident
        ],
        out_specs=pl.BlockSpec((OUT_F, TB), lambda i: (0, i)),     # lane-dense output
        compiler_params=pltpu.CompilerParams(
            dimension_semantics=("parallel",),                     # shard tiles across TCs on v7x
        ),
        cost_estimate=pl.CostEstimate(
            flops=2 * B_pad * (IN_F * H1_F + H1_F * H2_F + H2_F * 1),
            transcendentals=B_pad * (H1_F + H2_F + 1),
            bytes_accessed=4 * (B_pad * IN_F + _P_ROWS * _P_COLS + OUT_F * B_pad),
        ),
    )(x, P)

    return out_t[:, :B].T                            # back to (B, 2) like the PyTorch module


my_model_forward = jax.jit(_forward_impl)


def init_params(key):
    # Deterministic init mimicking nn.Linear default (uniform in +/- 1/sqrt(fan_in)).
    def linear(key, fan_in, fan_out):
        kw, kb = jax.random.split(key)
        bound = 1.0 / jnp.sqrt(fan_in)
        # stored transposed relative to PyTorch: [in, out]
        w = jax.random.uniform(kw, (fan_in, fan_out), jnp.float32, -bound, bound)
        b = jax.random.uniform(kb, (1, fan_out), jnp.float32, -bound, bound)
        return w, b

    k1, k2, k3 = jax.random.split(key, 3)
    w1, b1 = linear(k1, IN_F, H1_F)
    w2, b2 = linear(k2, H1_F, H2_F)
    w3, b3 = linear(k3, H2_F, OUT_F)
    return w1, b1, w2, b2, w3, b3


def reference_forward(x, w1, b1, w2, b2, w3, b3):
    h1 = jnp.tanh(x @ w1 + b1)
    h2 = jnp.tanh(h1 @ w2 + b2)
    y = h2 @ w3 + b3
    return jax.nn.softmax(y, axis=1)


if __name__ == "__main__":
    key = jax.random.PRNGKey(0)
    kx, kp = jax.random.split(key)
    params = init_params(kp)

    # Small case (single padded tile), matching the module's natural input shape.
    batch = 8
    x = jax.random.normal(kx, (batch, IN_F), dtype=jnp.float32)
    out = jax.block_until_ready(my_model_forward(x, *params))
    ref = reference_forward(x, *params)
    assert out.shape == (batch, OUT_F)
    assert jnp.allclose(out, ref, atol=1e-5, rtol=1e-5), "mismatch vs reference (batch=8)"
    assert jnp.allclose(jnp.sum(out, axis=1), jnp.ones(batch), atol=1e-5)

    # Larger case exercising multiple pipelined grid tiles + a zero-padded tail tile.
    batch2 = 1000
    x2 = jax.random.normal(jax.random.PRNGKey(1), (batch2, IN_F), dtype=jnp.float32)
    out2 = jax.block_until_ready(my_model_forward(x2, *params))
    ref2 = reference_forward(x2, *params)
    assert out2.shape == (batch2, OUT_F)
    assert jnp.allclose(out2, ref2, atol=1e-5, rtol=1e-5), "mismatch vs reference (batch=1000)"
    assert jnp.allclose(jnp.sum(out2, axis=1), jnp.ones(batch2), atol=1e-5)

    print("KERNEL_OK")
</pallas_src>

<mosaic_0001>
module attributes {stable_mosaic.version = 11 : i64} {
  func.func @mlp_kernel(%arg0: i32, %arg1: memref<128x28xf32, #tpu.memory_space<vmem>>, %arg2: memref<64x28xf32, #tpu.memory_space<vmem>>, %arg3: memref<2x128xf32, #tpu.memory_space<vmem>>) attributes {dimension_semantics = [#tpu.dimension_semantics<parallel>], iteration_bounds = array<i64: 1>, scalar_prefetch = 0 : i64, scratch_operands = 0 : i64, tpu.core_type = #tpu.core_type<tc>, window_params = [{transform_indices = @transform_0, window_bounds = array<i64: 128, 28>}, {pipeline_mode = #tpu.pipeline_mode<synchronous>, transform_indices = @transform_1, window_bounds = array<i64: 64, 28>}, {transform_indices = @transform_2, window_bounds = array<i64: 2, 128>}]} {
    %c0 = arith.constant 0 : index
    %c0_0 = arith.constant 0 : index
    %0 = vector.load %arg1[%c0, %c0_0] : memref<128x28xf32, #tpu.memory_space<vmem>>, vector<128x28xf32>
    %c0_1 = arith.constant 0 : index
    %c0_2 = arith.constant 0 : index
    %1 = vector.load %arg2[%c0_1, %c0_2] : memref<64x28xf32, #tpu.memory_space<vmem>>, vector<10x28xf32>
    %c16 = arith.constant 16 : index
    %c0_3 = arith.constant 0 : index
    %2 = vector.load %arg2[%c16, %c0_3] : memref<64x28xf32, #tpu.memory_space<vmem>>, vector<4x10xf32>
    %c24 = arith.constant 24 : index
    %c0_4 = arith.constant 0 : index
    %3 = vector.load %arg2[%c24, %c0_4] : memref<64x28xf32, #tpu.memory_space<vmem>>, vector<1x4xf32>
    %c32 = arith.constant 32 : index
    %c0_5 = arith.constant 0 : index
    %4 = vector.load %arg2[%c32, %c0_5] : memref<64x28xf32, #tpu.memory_space<vmem>>, vector<10x1xf32>
    %c48 = arith.constant 48 : index
    %c0_6 = arith.constant 0 : index
    %5 = vector.load %arg2[%c48, %c0_6] : memref<64x28xf32, #tpu.memory_space<vmem>>, vector<4x1xf32>
    %c56 = arith.constant 56 : index
    %c0_7 = arith.constant 0 : index
    %6 = vector.load %arg2[%c56, %c0_7] : memref<64x28xf32, #tpu.memory_space<vmem>>, vector<1x1xf32>
    %cst = arith.constant dense<0.000000e+00> : vector<10x128xf32>
    %7 = tpu.matmul %1, %0, %cst {dimension_numbers = #tpu.dot_dimension_numbers<[1], [1], [0], [0], [0, 0, 1, 0], [], []>} : vector<10x28xf32>, vector<128x28xf32>, vector<10x128xf32> -> vector<10x128xf32>
    %8 = vector.broadcast %4 : vector<10x1xf32> to vector<10x128xf32>
    %9 = arith.addf %7, %8 : vector<10x128xf32>
    %10 = math.tanh %9 : vector<10x128xf32>
    %cst_8 = arith.constant dense<0.000000e+00> : vector<4x128xf32>
    %11 = tpu.matmul %2, %10, %cst_8 {dimension_numbers = #tpu.dot_dimension_numbers<[1], [0], [0], [1], [0, 0, 1, 1], [], []>} : vector<4x10xf32>, vector<10x128xf32>, vector<4x128xf32> -> vector<4x128xf32>
    %12 = vector.broadcast %5 : vector<4x1xf32> to vector<4x128xf32>
    %13 = arith.addf %11, %12 : vector<4x128xf32>
    %14 = math.tanh %13 : vector<4x128xf32>
    %cst_9 = arith.constant dense<0.000000e+00> : vector<1x128xf32>
    %15 = tpu.matmul %3, %14, %cst_9 {dimension_numbers = #tpu.dot_dimension_numbers<[1], [0], [0], [1], [0, 0, 1, 1], [], []>} : vector<1x4xf32>, vector<4x128xf32>, vector<1x128xf32> -> vector<1x128xf32>
    %16 = vector.broadcast %6 : vector<1x1xf32> to vector<1x128xf32>
    %17 = arith.addf %15, %16 : vector<1x128xf32>
    %cst_10 = arith.constant 0.000000e+00 : f32
    %18 = vector.broadcast %cst_10 : f32 to vector<1x128xf32>
    %19 = arith.subf %18, %17 : vector<1x128xf32>
    %20 = math.exp %19 : vector<1x128xf32>
    %cst_11 = arith.constant 1.000000e+00 : f32
    %21 = vector.broadcast %cst_11 : f32 to vector<1x128xf32>
    %22 = arith.addf %21, %20 : vector<1x128xf32>
    %cst_12 = arith.constant 1.000000e+00 : f32
    %23 = vector.broadcast %cst_12 : f32 to vector<1x128xf32>
    %24 = arith.divf %23, %22 : vector<1x128xf32>
    %cst_13 = arith.constant 1.000000e+00 : f32
    %25 = vector.broadcast %cst_13 : f32 to vector<1x128xf32>
    %26 = arith.subf %25, %24 : vector<1x128xf32>
    %27 = tpu.concatenate %24, %26 in 0 : vector<1x128xf32>, vector<1x128xf32> -> vector<2x128xf32>
    %c0_14 = arith.constant 0 : index
    %c0_15 = arith.constant 0 : index
    %28 = vector.load %arg3[%c0_14, %c0_15] : memref<2x128xf32, #tpu.memory_space<vmem>>, vector<2x128xf32>
    tpu.vector_store %arg3[%c0_14, %c0_15], %27 {strides = array<i32>} : memref<2x128xf32, #tpu.memory_space<vmem>>, vector<2x128xf32>,
    return
  }
  func.func @transform_0(%arg0: i32) -> (i32, i32) {
    %c0_i32 = arith.constant 0 : i32
    %c0_i32_0 = arith.constant 0 : i32
    return %arg0, %c0_i32 : i32, i32
  }
  func.func @transform_1(%arg0: i32) -> (i32, i32) {
    %c0_i32 = arith.constant 0 : i32
    %c0_i32_0 = arith.constant 0 : i32
    %c0_i32_1 = arith.constant 0 : i32
    return %c0_i32, %c0_i32_0 : i32, i32
  }
  func.func @transform_2(%arg0: i32) -> (i32, i32) {
    %c0_i32 = arith.constant 0 : i32
    %c0_i32_0 = arith.constant 0 : i32
    return %c0_i32, %arg0 : i32, i32
  }
}

</mosaic_0001>

<bundles_post_ra>
// kernel: _forward_impl.1
= control target key start
LH: loop header
LB: loop body
LE: loop exit
PB: predicated region body
PF: predicated region fallthrough
CT: control target
= control target key end

     0   :  { %vm45_vm0 = vcmask 228352   ;;  %v468_v2 = vmov 0   ;;  %v469_v21 = vmov 0.0   ;;  %vm470_vm1 = vmmov 0   ;;  %s597_s0 = inlined_call_operand.vmem [shape: f32[128,28], index: 0, kind: input, shape index: {}]   ;;  %s598_s1 = inlined_call_operand.vmem [shape: f32[64,28], index: 1, kind: input, shape index: {}]   ;;  %s599_s2 = inlined_call_operand.vmem [shape: f32[2,128], index: 2, kind: output, shape index: {}]  }
   0x1   :  { %v26_v0 = vld [vmem:[%s597_s0 + $0x78] sm:$0xff]  ;;  %v25_v1 = vld [vmem:[%s597_s0 + $0x70] sm:$0xff]  ;;  %456 = vset.pattern.permute.xlu0 %v468_v2  ;;  %457 = vset.pattern.permute.xlu1 %v468_v2  ;;  %v24_v3 = vld [vmem:[%s597_s0 + $0x68] sm:$0xff]  ;;  %vm186_vm2 = vcmask 1041408   ;;  %vm182_vm3 = vcmask 80896   ;;  %vm270_vm4 = vcmask 1043456  }
   0x2   :  { %406 = vmatprep.subr.msk.mxu0 %vm45_vm0, %v26_v0  ;;  %v27_v4 = vld [vmem:[%s598_s1] sm:$0xff]  ;;  %v32_v5 = vld [vmem:[%s598_s1 + $0x28] sm:$0x3]  ;;  %v22_v8 = vld [vmem:[%s597_s0 + $0x58] sm:$0xff]  ;;  %441 = vmatprep.subr.mxu1 %v469_v21  ;;  %vm266_vm5 = vcmask 31744   ;;  %vm354_vm6 = vcmask 1040384  }
   0x3   :  { %407 = vmatpush3.xpose.msk.msra.mxu0 %vm45_vm0, %v26_v0  ;;  %438 = vmatprep.mubr.msk.f32.mxu0 %vm45_vm0, %v27_v4  ;;  %v23_v6 = vld [vmem:[%s597_s0 + $0x60] sm:$0xff]  ;;  %v21_v9 = vld [vmem:[%s597_s0 + $0x50] sm:$0xff]  ;;  %v20_v10 = vld [vmem:[%s597_s0 + $0x48] sm:$0xff] }
   0x4   :  { %408 = vmatprep.subr.msk.mxu0 %vm45_vm0, %v25_v1  ;;  %42 = vperm.xlu0 %456, %v32_v5   ;;  %v31_v7 = vld [vmem:[%s598_s1 + $0x20] sm:$0xff]  ;;  %v18_v12 = vld [vmem:[%s597_s0 + $0x38] sm:$0xff]  ;;  %v17_v13 = vld [vmem:[%s597_s0 + $0x30] sm:$0xff] }
   0x5   :  { %v19_v11 = vld [vmem:[%s597_s0 + $0x40] sm:$0xff]  ;;  %v16_v14 = vld [vmem:[%s597_s0 + $0x28] sm:$0xff]  ;;  %v14_v16 = vld [vmem:[%s597_s0 + $0x18] sm:$0xff]  ;;  %445 = vmatprep.mubr.msk.f32.mxu1 %vm470_vm1, %v469_v21 }
   0x6   :  { %v15_v15 = vld [vmem:[%s597_s0 + $0x20] sm:$0xff]  ;;  %v13_v17 = vld [vmem:[%s597_s0 + $0x10] sm:$0xff]  ;;  %v12_v18 = vld [vmem:[%s597_s0 + $0x8] sm:$0xff] }
   0x7   :  { %409 = vmatpush3.xpose.msk.msra.mxu0 %vm45_vm0, %v25_v1  ;;  %v11_v19 = vld [vmem:[%s597_s0] sm:$0xff]  ;;  %v28_v20 = vld [vmem:[%s598_s1 + $0x8] sm:$0x3]  ;;  %v33_v22 = vld [vmem:[%s598_s1 + $0x30] sm:$0xf] }
   0x8   :  { %410 = vmatprep.subr.msk.mxu0 %vm45_vm0, %v24_v3  ;;  %37 = vperm.xlu0 %456, %v31_v7   ;;  %v34_v23 = vld [vmem:[%s598_s1 + $0x38] sm:$0x1]  ;;  %v29_v31 = vld [vmem:[%s598_s1 + $0x10] sm:$0xf] }
   0x9   :  { %179 = vperm.xlu1 %457, %v33_v22   ;;  %v30_v37 = vld [vmem:[%s598_s1 + $0x18] sm:$0x1] }
   0xb   :  { %411 = vmatpush3.xpose.msk.msra.mxu0 %vm45_vm0, %v24_v3 }
   0xc   :  { %412 = vmatprep.subr.msk.mxu0 %vm45_vm0, %v23_v6 }
   0xd   :  { %263 = vperm.xlu1 %457, %v34_v23  }
   0xf   :  { %413 = vmatpush3.xpose.msk.msra.mxu0 %vm45_vm0, %v23_v6 }
  0x10   :  { %414 = vmatprep.subr.msk.mxu0 %vm45_vm0, %v22_v8 }
  0x13   :  { %415 = vmatpush3.xpose.msk.msra.mxu0 %vm45_vm0, %v22_v8 }
  0x14   :  { %416 = vmatprep.subr.msk.mxu0 %vm45_vm0, %v21_v9 }
  0x17   :  { %417 = vmatpush3.xpose.msk.msra.mxu0 %vm45_vm0, %v21_v9 }
  0x18   :  { %418 = vmatprep.subr.msk.mxu0 %vm45_vm0, %v20_v10 }
  0x1b   :  { %419 = vmatpush3.xpose.msk.msra.mxu0 %vm45_vm0, %v20_v10 }
  0x1c   :  { %420 = vmatprep.subr.msk.mxu0 %vm45_vm0, %v19_v11 }
  0x1f   :  { %421 = vmatpush3.xpose.msk.msra.mxu0 %vm45_vm0, %v19_v11 }
  0x20   :  { %422 = vmatprep.subr.msk.mxu0 %vm45_vm0, %v18_v12 }
  0x23   :  { %423 = vmatpush3.xpose.msk.msra.mxu0 %vm45_vm0, %v18_v12 }
  0x24   :  { %424 = vmatprep.subr.msk.mxu0 %vm45_vm0, %v17_v13 }
  0x27   :  { %425 = vmatpush3.xpose.msk.msra.mxu0 %vm45_vm0, %v17_v13 }
  0x28   :  { %426 = vmatprep.subr.msk.mxu0 %vm45_vm0, %v16_v14 }
  0x2b   :  { %427 = vmatpush3.xpose.msk.msra.mxu0 %vm45_vm0, %v16_v14 }
  0x2c   :  { %428 = vmatprep.subr.msk.mxu0 %vm45_vm0, %v15_v15 }
  0x2f   :  { %429 = vmatpush3.xpose.msk.msra.mxu0 %vm45_vm0, %v15_v15 }
  0x30   :  { %430 = vmatprep.subr.msk.mxu0 %vm45_vm0, %v14_v16 }
  0x33   :  { %431 = vmatpush3.xpose.msk.msra.mxu0 %vm45_vm0, %v14_v16 }
  0x34   :  { %432 = vmatprep.subr.msk.mxu0 %vm45_vm0, %v13_v17 }
  0x37   :  { %433 = vmatpush3.xpose.msk.msra.mxu0 %vm45_vm0, %v13_v17 }
  0x38   :  { %434 = vmatprep.subr.msk.mxu0 %vm45_vm0, %v12_v18 }
  0x3b   :  { %435 = vmatpush3.xpose.msk.msra.mxu0 %vm45_vm0, %v12_v18 }
  0x3c   :  { %436 = vmatprep.subr.msk.mxu0 %vm45_vm0, %v11_v19 }
  0x3f   :  { %437 = vmatpush3.xpose.msk.msra.mxu0 %vm45_vm0, %v11_v19 }
  0x42   :  { %439 = vmatmul.mubr.msk.f32.vlgmr.msra.gmra.mxu0 %vm45_vm0, %v28_v20 }
  0x7f   :  { %v43_v24 = vpop.permute.xlu0 %42 }
  0x83   :  { %v38_v27 = vpop.permute.xlu0 %37 }
  0x84   :  { %v180_v33 = vpop.permute.xlu1 %179 }
  0x88   :  { %v264_v39 = vpop.permute.xlu1 %263 }
 0x102   :  { %v440_v25 = vpop.f32.mrf.mxu0 }
 0x103   :  { %v172_v26 = vadd.f32 %v440_v25, %v43_v24 }
 0x104   :  { %v166_v28 = vpop.f32.mrf.mxu0 }
 0x105   :  { %458 = vtanh.f32 %v172_v26  ;;  %v167_v29 = vadd.f32 %v166_v28, %v38_v27 }
 0x107   :  { %460 = vtanh.f32 %v167_v29 }
 0x112   :  { %v459_v30 = vpop.eup %458 }
 0x113   :  { %442 = vmatpush3.msk.msra.mxu1 %vm186_vm2, %v459_v30 }
 0x114   :  { %v461_v32 = vpop.eup %460  ;;  %443 = vmatprep.subr.mxu1 %v469_v21 }
 0x115   :  { %444 = vmatpush3.msra.mxu1 %v461_v32 }
 0x116   :  { %446 = vmatmul.mubr.msk.f32.vlgmr.msra.gmra.mxu1 %vm182_vm3, %v29_v31  ;;  %448 = vmatprep.subr.mxu1 %v469_v21 }
 0x117   :  { %450 = vmatprep.mubr.msk.f32.mxu1 %vm470_vm1, %v469_v21 }
 0x1d6   :  { %v256_v34 = vpop.f32.mrf.mxu1 }
 0x1d7   :  { %v257_v35 = vadd.f32 %v256_v34, %v180_v33 }
 0x1d8   :  { %v447_v36 = vpop.f32.mrf.mxu1 }
 0x1d9   :  { %462 = vtanh.f32 %v257_v35 }
 0x1e6   :  { %v463_v38 = vpop.eup %462 }
 0x1e7   :  { %449 = vmatpush3.msk.msra.mxu1 %vm270_vm4, %v463_v38 }
 0x1e8   :  { %451 = vmatmul.mubr.msk.f32.vlgmr.msra.gmra.mxu1 %vm266_vm5, %v30_v37 }
 0x2a8   :  { %v340_v40 = vpop.f32.mrf.mxu1 }
 0x2a9   :  { %v341_v41 = vadd.f32 %v340_v40, %v264_v39 }
 0x2aa   :  { %v452_v42 = vpop.f32.mrf.mxu1 }
 0x2ab   :  { %v344_v43 = vsub.f32 0.0, %v341_v41 }
 0x2ad   :  { %v345_v44 = vmul.f32 1.442695, %v344_v43 }
 0x2af   :  { %464 = vpow2.f32 %v345_v44 }
 0x2bc   :  { %v465_v45 = vpop.eup %464 }
 0x2bd   :  { %v347_v46 = vadd.f32 1.0, %v465_v45 }
 0x2bf   :  { %466 = vrcp.f32 %v347_v46 }
 0x2cc   :  { %v467_v47 = vpop.eup %466 }
 0x2cd   :  { %v350_v48 = vsub.f32 1.0, %v467_v47 }
 0x2cf   :  { %v352_v49 = vrot.slane %v350_v48, 7 }
 0x2d1   :  { %v355_v50 = vsel %vm354_vm6, %v467_v47, %v352_v49 }
 0x2d2   :  { %356 = vst [vmem:[%s599_s2] sm:$0x3] %v355_v50 }

</bundles_post_ra>
